<compile_context>
chip_gen: v5e
topology: v5e:2x2
jax: 0.10.0
libtpu: 0.0.40
codegen_flags: <defaults>
</compile_context>

<pallas_src>
import functools

import jax
import jax.numpy as jnp
from jax.experimental import pallas as pl
from jax.experimental.pallas import tpu as pltpu


def _round_up(x: int, m: int) -> int:
    return (x + m - 1) // m * m


def _vmem_budget_bytes() -> int:
    """Usable VMEM per core, leaving headroom for Mosaic internal scratch."""
    cap = 64 * 1024 * 1024  # conservative default (v7x physical VMEM per TC)
    try:
        cap = int(pltpu.get_tpu_info().vmem_capacity_bytes)
    except Exception:
        pass
    return max(cap - 12 * 1024 * 1024, (cap * 3) // 4)


def _pick_tk(d_model: int) -> int:
    """K (d_model) tile: untiled when small, tiled when large & divisible."""
    if d_model <= 2048:
        return d_model
    for tk in (2048, 1024, 512, 256):
        if d_model % tk == 0:
            return tk
    return d_model  # awkward d_model: keep untiled rather than pad K per call


# --------------------------------- kernels ----------------------------------

def _linear_bias_kernel(x_ref, w_ref, b_ref, o_ref):
    # x: (tm, K)  w: (K, tn)  b: (1, tn)  o: (tm, tn); K untiled.
    acc = jnp.dot(x_ref[...], w_ref[...], preferred_element_type=jnp.float32)
    o_ref[...] = (acc + b_ref[...].astype(jnp.float32)).astype(o_ref.dtype)


def _linear_bias_kernel_ktiled(x_ref, w_ref, b_ref, o_ref, acc_ref):
    # grid = (M tiles, vocab tiles, K tiles); K innermost ("arbitrary").
    k = pl.program_id(2)

    @pl.when(k == 0)
    def _():
        acc_ref[...] = jnp.zeros_like(acc_ref)

    acc_ref[...] += jnp.dot(x_ref[...], w_ref[...],
                            preferred_element_type=jnp.float32)

    @pl.when(k == pl.num_programs(2) - 1)
    def _():
        o_ref[...] = (acc_ref[...] + b_ref[...].astype(jnp.float32)
                      ).astype(o_ref.dtype)


# ------------------------------ param helpers -------------------------------

def prepare_generator_params(weight, bias, *, tn=1024,
                             compute_dtype=jnp.bfloat16):
    """One-time parameter preparation (call at init, NOT per forward).

    weight: (vocab_size, d_model)  -- PyTorch nn.Linear layout
    bias:   (vocab_size,)
    Returns (w_t, b2d, vocab_size):
      w_t : (d_model, V_pad) in compute_dtype  (transposed + padded ONCE)
      b2d : (1, V_pad) float32
    """
    vocab_size, d_model = weight.shape
    tn = max(128, _round_up(tn, 128))
    V_pad = vocab_size if vocab_size <= tn else _round_up(vocab_size, tn)
    w_t = jnp.asarray(weight).astype(compute_dtype).T         # once, at init
    b2d = jnp.asarray(bias).reshape(1, -1).astype(jnp.float32)
    if V_pad != vocab_size:
        w_t = jnp.pad(w_t, ((0, 0), (0, V_pad - vocab_size)))
        b2d = jnp.pad(b2d, ((0, 0), (0, V_pad - vocab_size)))
    return w_t, b2d, int(vocab_size)


def init_generator_params(key, d_model, vocab_size, dtype=jnp.float32):
    """nn.Linear default init (uniform +-1/sqrt(fan_in)), PyTorch layout."""
    kw, kb = jax.random.split(key)
    bound = 1.0 / (d_model ** 0.5)
    weight = jax.random.uniform(kw, (vocab_size, d_model), dtype, -bound, bound)
    bias = jax.random.uniform(kb, (vocab_size,), dtype, -bound, bound)
    return weight, bias


# --------------------------------- forward ----------------------------------

@functools.partial(jax.jit,
                   static_argnames=("vocab_size", "tm", "tn", "out_dtype"))
def generator_forward(x, w_t, bias, *, vocab_size=None, tm=256, tn=1024,
                      out_dtype=None):
    """Pallas Generator.forward: y = x @ W^T + b.

    x:    (batch, seq, d_model)
    w_t:  (d_model, V) weight already transposed (and optionally bf16-cast /
          vocab-padded) -- produce it once with prepare_generator_params().
    bias: (V,) or (1, V)
    vocab_size: true vocab size (<= V) when w_t/bias were padded at prep time.
    out_dtype:  logits dtype (default: x.dtype; pass jnp.bfloat16 to halve the
                logits writeback stream on mem-bound gens).
    """
    batch, seq, d_model = x.shape
    assert w_t.shape[0] == d_model, "w_t must be (d_model, vocab[_padded])"
    V = w_t.shape[1]
    vocab = V if vocab_size is None else int(vocab_size)
    if out_dtype is None:
        out_dtype = x.dtype

    M = batch * seq
    x2d = x.reshape(M, d_model)
    if x2d.dtype != w_t.dtype:            # cast only the (small) activation
        x2d = x2d.astype(w_t.dtype)
    b2d = jnp.reshape(bias, (1, -1)).astype(jnp.float32)

    # ---- tile selection ----------------------------------------------------
    tm = max(8, _round_up(tm, 8))
    tn = max(128, _round_up(tn, 128))
    tk = _pick_tk(d_model)
    grid_k = d_model // tk

    if V <= tn:
        tn_eff = V            # single vocab tile: no alignment/padding needed
    else:
        tn_eff = tn
    V_work = V if V <= tn_eff else _round_up(V, tn_eff)
    if V_work != V:
        # Slow fallback: pads the full weight every call.  Avoid it by padding
        # once at init via prepare_generator_params().
        w_t = jnp.pad(w_t, ((0, 0), (0, V_work - V)))
    if b2d.shape[1] != V_work:
        b2d = jnp.pad(b2d, ((0, 0), (0, V_work - b2d.shape[1])))

    # Evened-out M tiles (multiple of 8) -> small padding waste for awkward M.
    grid_m0 = pl.cdiv(M, tm)
    tm_eff = _round_up(pl.cdiv(M, grid_m0), 8)

    # Shrink tiles until the double-buffered working set fits the VMEM budget.
    x_it = jnp.dtype(x2d.dtype).itemsize
    w_it = jnp.dtype(w_t.dtype).itemsize
    o_it = jnp.dtype(out_dtype).itemsize

    def _need(tm_e, tn_e):
        per = (tm_e * tk * x_it + tk * tn_e * w_it
               + tm_e * tn_e * o_it + tn_e * 4)
        return 2 * per + (tm_e * tn_e * 4 if grid_k > 1 else 0)

    budget = _vmem_budget_bytes()
    while (_need(tm_eff, tn_eff) > budget and tn_eff > 128
           and tn_eff % 256 == 0 and V_work % (tn_eff // 2) == 0):
        tn_eff //= 2
    while _need(tm_eff, tn_eff) > budget and tm_eff > 8:
        tm_eff = max(8, _round_up(tm_eff // 2, 8))

    M_pad = _round_up(M, tm_eff)
    if M_pad != M:
        x2d = jnp.pad(x2d, ((0, M_pad - M), (0, 0)))
    grid_m = M_pad // tm_eff
    grid_n = V_work // tn_eff

    # ---- grid / specs --------------------------------------------------------
    if grid_k > 1:
        # Large d_model: tile K with an f32 accumulator (K innermost).
        grid = (grid_m, grid_n, grid_k)
        in_specs = [
            pl.BlockSpec((tm_eff, tk), lambda i, j, k: (i, k)),
            pl.BlockSpec((tk, tn_eff), lambda i, j, k: (k, j)),
            pl.BlockSpec((1, tn_eff), lambda i, j, k: (0, j)),
        ]
        out_spec = pl.BlockSpec((tm_eff, tn_eff), lambda i, j, k: (i, j))
        scratch = [pltpu.VMEM((tm_eff, tn_eff), jnp.float32)]
        kernel = _linear_bias_kernel_ktiled
        dims = ("parallel", "parallel", "arbitrary")
    elif grid_m <= 2:
        # Decode-style / small M: x tile resident, weight streams continuously
        # (no weight-tile-boundary DMA bubble; weight read exactly once).
        grid = (grid_m, grid_n)
        in_specs = [
            pl.BlockSpec((tm_eff, d_model), lambda i, j: (i, 0)),
            pl.BlockSpec((d_model, tn_eff), lambda i, j: (0, j)),
            pl.BlockSpec((1, tn_eff), lambda i, j: (0, j)),
        ]
        out_spec = pl.BlockSpec((tm_eff, tn_eff), lambda i, j: (i, j))
        scratch = []
        kernel = _linear_bias_kernel
        dims = ("parallel", "parallel")
    else:
        # Many M tiles: vocab outer so the (d_model, tn) weight tile stays
        # resident across the whole inner M sweep (weight read from HBM once).
        grid = (grid_n, grid_m)
        in_specs = [
            pl.BlockSpec((tm_eff, d_model), lambda j, i: (i, 0)),
            pl.BlockSpec((d_model, tn_eff), lambda j, i: (0, j)),
            pl.BlockSpec((1, tn_eff), lambda j, i: (0, j)),
        ]
        out_spec = pl.BlockSpec((tm_eff, tn_eff), lambda j, i: (i, j))
        scratch = []
        kernel = _linear_bias_kernel
        dims = ("parallel", "parallel")

    vmem_limit = int(min(budget, max(2 * _need(tm_eff, tn_eff),
                                     32 * 1024 * 1024)))

    cost = pl.CostEstimate(
        flops=2 * M * d_model * vocab,
        transcendentals=0,
        bytes_accessed=int(x2d.size * x_it + w_t.size * w_it
                           + b2d.size * 4 + M_pad * V_work * o_it),
    )

    out = pl.pallas_call(
        kernel,
        out_shape=jax.ShapeDtypeStruct((M_pad, V_work), out_dtype),
        grid_spec=pltpu.PrefetchScalarGridSpec(
            num_scalar_prefetch=0,
            grid=grid,
            in_specs=in_specs,
            out_specs=out_spec,
            scratch_shapes=scratch,
        ),
        compiler_params=pltpu.CompilerParams(
            dimension_semantics=dims,
            vmem_limit_bytes=vmem_limit,
        ),
        cost_estimate=cost,
    )(x2d, w_t, b2d)

    out = out[:M, :vocab]
    # TODO(synk): optionally fuse the downstream log-softmax into this kernel
    # to avoid writing the full (M, vocab) logits stream back to HBM.
    return out.reshape(batch, seq, vocab)


# ----------------------------------- demo -----------------------------------

if __name__ == "__main__":
    key = jax.random.PRNGKey(0)

    def check(batch, seq, d_model, vocab):
        kx, kp = jax.random.split(jax.random.fold_in(key, vocab * 1000 + d_model))
        x = jax.random.normal(kx, (batch, seq, d_model), dtype=jnp.float32)
        weight, bias = init_generator_params(kp, d_model, vocab)
        # one-time prep: bf16 cast + transpose + vocab padding (NOT per call)
        w_t, b2d, vsz = prepare_generator_params(weight, bias)
        y = jax.block_until_ready(
            generator_forward(x, w_t, b2d, vocab_size=vsz))
        ref = x @ weight.T + bias                      # f32 reference
        assert y.shape == (batch, seq, vocab), (y.shape, (batch, seq, vocab))
        # bf16 MXU operands with f32 accumulation -> loose elementwise tol
        assert jnp.allclose(y, ref, atol=5e-2, rtol=5e-2), \
            float(jnp.max(jnp.abs(y - ref)))

    # small shapes consistent with the module
    check(batch=2, seq=8,   d_model=32, vocab=128)    # aligned, M-outer path
    check(batch=3, seq=5,   d_model=32, vocab=200)    # odd M / odd vocab, no pads
    check(batch=2, seq=264, d_model=64, vocab=1300)   # padded vocab, vocab-outer path

    print("KERNEL_OK")
</pallas_src>

<mosaic_0001>
module attributes {stable_mosaic.version = 11 : i64} {
  func.func @_linear_bias_kernel(%arg0: i32, %arg1: i32, %arg2: memref<16x32xbf16, #tpu.memory_space<vmem>>, %arg3: memref<32x128xbf16, #tpu.memory_space<vmem>>, %arg4: memref<1x128xf32, #tpu.memory_space<vmem>>, %arg5: memref<16x128xf32, #tpu.memory_space<vmem>>) attributes {dimension_semantics = [#tpu.dimension_semantics<parallel>, #tpu.dimension_semantics<parallel>], iteration_bounds = array<i64: 1, 1>, scalar_prefetch = 0 : i64, scratch_operands = 0 : i64, tpu.core_type = #tpu.core_type<tc>, window_params = [{transform_indices = @transform_0, window_bounds = array<i64: 16, 32>}, {transform_indices = @transform_1, window_bounds = array<i64: 32, 128>}, {transform_indices = @transform_2, window_bounds = array<i64: 1, 128>}, {transform_indices = @transform_3, window_bounds = array<i64: 16, 128>}]} {
    %c0 = arith.constant 0 : index
    %c0_0 = arith.constant 0 : index
    %0 = vector.load %arg2[%c0, %c0_0] : memref<16x32xbf16, #tpu.memory_space<vmem>>, vector<16x32xbf16>
    %c0_1 = arith.constant 0 : index
    %c0_2 = arith.constant 0 : index
    %1 = vector.load %arg3[%c0_1, %c0_2] : memref<32x128xbf16, #tpu.memory_space<vmem>>, vector<32x128xbf16>
    %cst = arith.constant dense<0.000000e+00> : vector<16x128xf32>
    %2 = tpu.matmul %0, %1, %cst {dimension_numbers = #tpu.dot_dimension_numbers<[1], [0], [0], [1], [0, 0, 1, 1], [], []>} : vector<16x32xbf16>, vector<32x128xbf16>, vector<16x128xf32> -> vector<16x128xf32>
    %c0_3 = arith.constant 0 : index
    %c0_4 = arith.constant 0 : index
    %3 = vector.load %arg4[%c0_3, %c0_4] : memref<1x128xf32, #tpu.memory_space<vmem>>, vector<1x128xf32>
    %4 = vector.broadcast %3 : vector<1x128xf32> to vector<16x128xf32>
    %5 = arith.addf %2, %4 : vector<16x128xf32>
    %c0_5 = arith.constant 0 : index
    %c0_6 = arith.constant 0 : index
    %6 = vector.load %arg5[%c0_5, %c0_6] : memref<16x128xf32, #tpu.memory_space<vmem>>, vector<16x128xf32>
    tpu.vector_store %arg5[%c0_5, %c0_6], %5 {strides = array<i32>} : memref<16x128xf32, #tpu.memory_space<vmem>>, vector<16x128xf32>,
    return
  }
  func.func @transform_0(%arg0: i32, %arg1: i32) -> (i32, i32) {
    %c0_i32 = arith.constant 0 : i32
    %c0_i32_0 = arith.constant 0 : i32
    return %arg0, %c0_i32 : i32, i32
  }
  func.func @transform_1(%arg0: i32, %arg1: i32) -> (i32, i32) {
    %c0_i32 = arith.constant 0 : i32
    %c0_i32_0 = arith.constant 0 : i32
    return %c0_i32, %arg1 : i32, i32
  }
  func.func @transform_2(%arg0: i32, %arg1: i32) -> (i32, i32) {
    %c0_i32 = arith.constant 0 : i32
    %c0_i32_0 = arith.constant 0 : i32
    return %c0_i32, %arg1 : i32, i32
  }
  func.func @transform_3(%arg0: i32, %arg1: i32) -> (i32, i32) {
    %c0_i32 = arith.constant 0 : i32
    return %arg0, %arg1 : i32, i32
  }
}

</mosaic_0001>

<bundles_post_ra>
// kernel: generator_forward.1
= control target key start
LH: loop header
LB: loop body
LE: loop exit
PB: predicated region body
PF: predicated region fallthrough
CT: control target
= control target key end

     0   :  { %s165_s0 = inlined_call_operand.vmem [shape: bf16[16,32], index: 0, kind: input, shape index: {}]   ;;  %s166_s1 = inlined_call_operand.vmem [shape: bf16[32,128], index: 1, kind: input, shape index: {}]   ;;  %s167_s2 = inlined_call_operand.vmem [shape: f32[1,128], index: 2, kind: input, shape index: {}]   ;;  %s168_s3 = inlined_call_operand.hbm [shape: f32[16,128], index: 3, kind: output, shape index: {}]  }
   0x1   :  { %v96_v0 = vld [vmem:[%s166_s1 + $0x8] sm:$0xff] }
   0x2   :  { %8 = vsyncpa [#allocation3], 0  ;;  %53 = vmatpush.bf16.msra.mxu0 %v96_v0  ;;  %v95_v1 = vld [vmem:[%s166_s1] sm:$0xff]  ;;  %vm43_vm0 = vcmask 261120   ;;  %s127_s20 = smov [#allocation2]   ;;  %s69_s1 = sshll.u32 %s168_s3, 4  ;;  %s70_s1 = int_to_ptr.hbm [resolvable:$true] %s69_s1 }
   0x3   :  { %v94_v2 = vld [vmem:[%s165_s0] sm:$0xff]  ;;  %s67_s21 = sshll.u32 %s127_s20, 4  ;;  %s128_s0 = smov 128   ;;  %s68_s21 = int_to_ptr.vmem [resolvable:$true] %s67_s21 }
   0x4   :  { %v100_v3 = vld [vmem:[%s167_s2] ss:$0 sm:$0xff]  ;;  %s129_s24 = smov 8  }
   0x6   :  { %54 = vmatpush.bf16.msra.mxu0 %v95_v1 }
   0x9   :  { %93 = vmatmul.msk.bf16.vlgmr.msra.gmra.mxu0 %vm43_vm0, %v94_v2 }
  0x86   :  { %v56_v4 = vpop.f32.mrf.mxu0 }
  0x87   :  { %v57_v5 = vadd.f32 %v100_v3, %v56_v4 }
  0x89   :  { %61 = vst [vmem:[#allocation2] sm:$0xff] %v57_v5 }
  0x8e   :  { %v58_v6 = vpop.f32.mrf.mxu0 }
  0x8f   :  { %v59_v7 = vadd.f32 %v100_v3, %v58_v6 }
  0x91   :  { %62 = vst [vmem:[#allocation2 + $0x8] sm:$0xff] %v59_v7 }
  0x92   :  { %75 = dma.vmem_to_hbm [thread:$0]  %s68_s21, 256, %s70_s1, [#allocation3], %s128_s0, %s128_s0, %s129_s24  }
  0x93   :  { %125 = dma.done.wait [#allocation3], 256  }
  0x94   :  { %126 = vsyncadd [#allocation3], 4294967040 }
  0x95   :  { %80 = vsyncpa [#allocation3], 1 }

</bundles_post_ra>
